<compile_context>
chip_gen: v7x
topology: tpu7x:2x2x1
jax: 0.10.0
libtpu: 0.0.40
codegen_flags: <defaults>
</compile_context>

<pallas_src>
import math

import numpy as np
import jax
import jax.numpy as jnp
from jax import lax
from jax.experimental import pallas as pl
from jax.experimental.pallas import tpu as pltpu


def _make_kernel(TH, W, Cin, Cmid, Cout, n_row_tiles, mxu_dtype):
    L = TH * W
    f32 = jnp.float32

    def kernel(x_ref, halo_ref, s1_ref, c1_ref, wt_ref, b2_ref, wf_ref, bf_ref, o_ref):
        s1 = s1_ref[...]                     # (Cin, 1) folded BN1 scale
        c1 = c1_ref[...]                     # (Cin, 1) folded BN1 bias

        # BN1 + ReLU on the current row tile
        a = jnp.maximum(x_ref[...].astype(f32) * s1 + c1, 0.0)          # (Cin, L)

        # border masks generated in-kernel (no operand DMAs)
        lane = lax.broadcasted_iota(jnp.int32, (1, L), 1)
        colmask = ((lane % W) < (W - 1)).astype(f32)                    # col+1 exists
        lastrow = (lane >= (TH - 1) * W).astype(f32)                    # tile's last row

        # x[j+1, l]: in-tile row shift; the tile's last row comes from the 1-row halo
        # (first row of the next tile), gated off on the image's last row-tile
        # (ConvTranspose2d output_padding semantics).
        if TH > 1:
            a_h = pltpu.roll(a, L - W, axis=1) * (1.0 - lastrow)
        else:
            a_h = jnp.zeros_like(a)
        if n_row_tiles > 1:
            gate = 1.0 - (pl.program_id(0) == pl.num_programs(0) - 1).astype(f32)
            halo_act = jnp.maximum(halo_ref[...].astype(f32) * s1 + c1, 0.0) * gate
            if TH > 1:
                halo_act = jnp.concatenate(
                    [jnp.zeros((Cin, (TH - 1) * W), f32), halo_act], axis=1)
            a_h = a_h + halo_act                                        # (Cin, L)

        a_w = pltpu.roll(a, L - 1, axis=1) * colmask                    # x[j,   l+1]
        a_hw = pltpu.roll(a_h, L - 1, axis=1) * colmask                 # x[j+1, l+1]

        # ConvTranspose taps (BN2 scale folded into wt_ref, bias folded into b2_ref):
        # 4 accumulating MXU dots, one per shifted activation (no staging scratch).
        z = jnp.dot(wt_ref[0], a.astype(mxu_dtype), preferred_element_type=f32)
        z = z + jnp.dot(wt_ref[1], a_h.astype(mxu_dtype), preferred_element_type=f32)
        z = z + jnp.dot(wt_ref[2], a_w.astype(mxu_dtype), preferred_element_type=f32)
        z = z + jnp.dot(wt_ref[3], a_hw.astype(mxu_dtype), preferred_element_type=f32)
        y = jnp.maximum(z + b2_ref[...], 0.0)                           # (4*Cmid, L)

        # 1x1 conv head as one block-diagonal matmul, lane-dense combined output
        o = jnp.dot(wf_ref[...], y.astype(mxu_dtype), preferred_element_type=f32)
        o_ref[...] = (o + bf_ref[...]).astype(o_ref.dtype)              # (4*Cout, L)

    return kernel


def _pspec(shape):
    zeros = (0,) * len(shape)
    return pl.BlockSpec(shape, lambda t, n, _z=zeros: _z)


def _tile_bytes(L, Cin, Cmid, Cout, in_bytes, out_bytes):
    """Rough per-step VMEM footprint: double-buffered blocks + in-kernel temporaries."""
    dma = 2 * Cin * in_bytes + 2 * 4 * Cout * out_bytes
    tmp = (6 * Cin + 6 * Cmid + 6 * Cout) * 4
    return (dma + tmp) * L


def _pick_rows_per_tile(N, H, W, Cin, Cmid, Cout, in_bytes, out_bytes,
                        max_lanes, vmem_budget_bytes):
    """Largest whole-row tile with lane count %128 (or full image) within the VMEM budget."""
    valid = []
    for th in range(1, H + 1):
        if H % th:
            continue
        L = th * W
        if (L % 128 != 0) and th != H:
            continue
        if L > max_lanes:
            continue
        if _tile_bytes(L, Cin, Cmid, Cout, in_bytes, out_bytes) > vmem_budget_bytes:
            continue
        valid.append(th)
    if not valid:
        return H
    if N == 1:
        sub = [th for th in valid if th < H]
        if sub:                 # keep >= 2 grid steps so both v7x TensorCores get work
            return max(sub)
    return max(valid)


def seghead_forward(x_nchw, p, eps=1e-5, rows_per_tile=None,
                    in_dtype=jnp.bfloat16, out_dtype=jnp.bfloat16,
                    mxu_dtype=jnp.bfloat16,
                    max_lanes=32768, vmem_budget_bytes=24 << 20):
    """Pallas implementation of SegHead.forward (aux_head=False, eval-mode BN).

    in_dtype/out_dtype: dtypes carried over HBM (bf16 default halves the dominant streams;
    all VPU math is f32).  mxu_dtype: matmul operand dtype (bf16 default, f32 accumulate).
    Pass f32 for all three for bit-accurate-to-reference behaviour.
    """
    N, Cin, H, W = x_nchw.shape
    Cmid = p['wt'].shape[1]
    Cout = p['wf'].shape[0]
    f32 = jnp.float32
    in_bytes = jnp.dtype(in_dtype).itemsize
    out_bytes = jnp.dtype(out_dtype).itemsize

    if rows_per_tile is None:
        TH = _pick_rows_per_tile(N, H, W, Cin, Cmid, Cout, in_bytes, out_bytes,
                                 max_lanes, vmem_budget_bytes)
    else:
        TH = rows_per_tile
    assert H % TH == 0, "rows_per_tile must divide H"
    nT = H // TH
    L = TH * W
    if nT > 1:
        assert L % 128 == 0, "rows_per_tile * W must be a multiple of 128 when tiling"

    # NCHW is channel-major: flattening spatial dims needs no transpose.
    x = x_nchw.astype(in_dtype).reshape(N, Cin, H * W)
    # 1-row halo per row-tile: raw input row min((t+1)*TH, H-1).  The last tile's halo is a
    # dummy row that the kernel gates off (ConvTranspose output_padding row).  Tiny array.
    halo = jnp.concatenate([x_nchw[:, :, TH::TH, :], x_nchw[:, :, H - 1:H, :]], axis=2)
    halo = jnp.transpose(halo, (0, 2, 1, 3)).astype(in_dtype)          # (N, nT, Cin, W)

    # fold eval-mode BN1 into scale/bias (channels on the sublane axis)
    inv1 = p['g1'] / jnp.sqrt(p['v1'] + eps)
    s1 = inv1.reshape(Cin, 1).astype(f32)
    c1 = (p['b1'] - p['m1'] * inv1).reshape(Cin, 1).astype(f32)

    s2 = p['g2'] / jnp.sqrt(p['v2'] + eps)
    c2 = p['b2'] - p['m2'] * s2

    # Sub-pixel decomposition of ConvTranspose2d(k=3, s=2, p=1, op=1) over output parities
    # [ee, eo, oe, oo]: one (4*Cmid, Cin) tap matrix per shifted activation.
    #   ee = T(1,1)@a ; eo = T(1,2)@a + T(1,0)@a_w ; oe = T(2,1)@a + T(0,1)@a_h
    #   oo = T(2,2)@a + T(0,2)@a_h + T(2,0)@a_w + T(0,0)@a_hw
    def T(kh, kw):
        return jnp.transpose(p['wt'][:, :, kh, kw]).astype(f32)       # (Cmid, Cin)
    Z = jnp.zeros((Cmid, Cin), f32)
    Wa = jnp.concatenate([T(1, 1), T(1, 2), T(2, 1), T(2, 2)], axis=0)
    Wh = jnp.concatenate([Z, Z, T(0, 1), T(0, 2)], axis=0)
    Ww = jnp.concatenate([Z, T(1, 0), Z, T(2, 0)], axis=0)
    Whw = jnp.concatenate([Z, Z, Z, T(0, 0)], axis=0)
    bn2s = jnp.tile(s2, 4).reshape(1, 4 * Cmid, 1).astype(f32)
    Wt = (jnp.stack([Wa, Wh, Ww, Whw], axis=0) * bn2s).astype(mxu_dtype)  # (4, 4*Cmid, Cin)
    b2f = jnp.tile(p['bt'] * s2 + c2, 4).reshape(4 * Cmid, 1).astype(f32)

    # 1x1 conv as one block-diagonal matmul over the 4 parities
    wf_mat = p['wf'].reshape(Cout, Cmid).astype(f32)
    WF = jnp.kron(jnp.eye(4, dtype=f32), wf_mat).astype(mxu_dtype)        # (4*Cout, 4*Cmid)
    bfb = jnp.tile(p['bf'], 4).reshape(4 * Cout, 1).astype(f32)

    # VMEM limit sized from the per-step estimate; capped conservatively for v7x (64 MiB phys).
    est = _tile_bytes(L, Cin, Cmid, Cout, in_bytes, out_bytes)
    vmem_limit = int(min(60 << 20, max(32 << 20, 2 * est + (4 << 20))))

    x_spec = pl.BlockSpec((None, Cin, L), lambda t, n: (n, 0, t))
    halo_spec = pl.BlockSpec((None, None, Cin, W), lambda t, n: (n, t, 0, 0))
    out_spec = pl.BlockSpec((None, None, 4 * Cout, L), lambda t, n: (n, t, 0, 0))

    out = pl.pallas_call(
        _make_kernel(TH, W, Cin, Cmid, Cout, nT, mxu_dtype),
        grid=(nT, N),
        in_specs=[x_spec, halo_spec,
                  _pspec((Cin, 1)), _pspec((Cin, 1)),
                  _pspec((4, 4 * Cmid, Cin)), _pspec((4 * Cmid, 1)),
                  _pspec((4 * Cout, 4 * Cmid)), _pspec((4 * Cout, 1))],
        out_specs=out_spec,
        out_shape=jax.ShapeDtypeStruct((N, nT, 4 * Cout, L), out_dtype),
        compiler_params=pltpu.CompilerParams(
            dimension_semantics=("parallel", "parallel"),
            vmem_limit_bytes=vmem_limit),
    )(x, halo, s1, c1, Wt, b2f, WF, bfb)

    # TODO(synk): the 2x2 pixel-shuffle (parity un-interleave) stays in the wrapper; a fully
    # in-kernel lane interleave would need strided / lane-shuffling stores that do not lower
    # robustly.  With the bf16 default output it now touches half the bytes of the f32 path.
    o = out.reshape(N, nT, 2, 2, Cout, TH, W)
    o = jnp.transpose(o, (0, 4, 1, 5, 2, 6, 3))
    return o.reshape(N, Cout, 2 * H, 2 * W)


def seghead_reference(x_nchw, p, eps=1e-5):
    """Pure-JAX reference (matches PyTorch eval-mode semantics)."""
    x = jnp.transpose(x_nchw, (0, 2, 3, 1)).astype(jnp.float32)
    x = (x - p['m1']) / jnp.sqrt(p['v1'] + eps) * p['g1'] + p['b1']
    x = jnp.maximum(x, 0.0)
    # ConvTranspose2d(k=3, s=2, p=1, op=1) == dilated conv with flipped/transposed kernel
    w_hwio = jnp.transpose(p['wt'][:, :, ::-1, ::-1], (2, 3, 0, 1))   # (3,3,Cin,Cmid)
    y = lax.conv_general_dilated(
        x, w_hwio, window_strides=(1, 1), padding=((1, 2), (1, 2)),
        lhs_dilation=(2, 2), dimension_numbers=('NHWC', 'HWIO', 'NHWC')) + p['bt']
    y = (y - p['m2']) / jnp.sqrt(p['v2'] + eps) * p['g2'] + p['b2']
    y = jnp.maximum(y, 0.0)
    Cout, Cmid = p['wf'].shape[0], p['wf'].shape[1]
    out = jnp.einsum('nhwc,oc->nhwo', y, p['wf'].reshape(Cout, Cmid)) + p['bf']
    return jnp.transpose(out, (0, 3, 1, 2))


if __name__ == "__main__":
    N, Cin, Cmid, Cout, H, W = 2, 4, 8, 3, 16, 16   # inplanes=4, interplanes=8, outplanes=3

    keys = jax.random.split(jax.random.PRNGKey(0), 14)
    p = {
        'g1': jax.random.uniform(keys[0], (Cin,), minval=0.5, maxval=1.5),
        'b1': jax.random.normal(keys[1], (Cin,)) * 0.1,
        'm1': jax.random.normal(keys[2], (Cin,)) * 0.1,
        'v1': jax.random.uniform(keys[3], (Cin,), minval=0.5, maxval=1.5),
        'wt': jax.random.normal(keys[4], (Cin, Cmid, 3, 3)) / math.sqrt(Cin * 9),
        'bt': jax.random.normal(keys[5], (Cmid,)) * 0.05,
        'g2': jax.random.uniform(keys[6], (Cmid,), minval=0.5, maxval=1.5),
        'b2': jax.random.normal(keys[7], (Cmid,)) * 0.1,
        'm2': jax.random.normal(keys[8], (Cmid,)) * 0.1,
        'v2': jax.random.uniform(keys[9], (Cmid,), minval=0.5, maxval=1.5),
        'wf': jax.random.normal(keys[10], (Cout, Cmid, 1, 1)) / math.sqrt(Cmid),
        'bf': jax.random.normal(keys[11], (Cout,)) * 0.05,
    }
    x = jax.random.normal(keys[12], (N, Cin, H, W), dtype=jnp.float32)

    ref = seghead_reference(x, p)

    # 1) strict f32 path, row-tiled (2 tiles/image -> exercises the 1-row halo / row shift)
    out_f32_tiled = jax.block_until_ready(
        seghead_forward(x, p, rows_per_tile=8,
                        in_dtype=jnp.float32, out_dtype=jnp.float32, mxu_dtype=jnp.float32))
    assert out_f32_tiled.shape == (N, Cout, 2 * H, 2 * W)
    np.testing.assert_allclose(np.asarray(out_f32_tiled), np.asarray(ref),
                               rtol=1e-3, atol=1e-3)

    # 2) strict f32 path, auto tile (full image per grid step -> no-halo code path)
    out_f32_full = jax.block_until_ready(
        seghead_forward(x, p,
                        in_dtype=jnp.float32, out_dtype=jnp.float32, mxu_dtype=jnp.float32))
    np.testing.assert_allclose(np.asarray(out_f32_full), np.asarray(ref),
                               rtol=1e-3, atol=1e-3)

    # 3) default fast path (bf16 input DMA, bf16 MXU operands, bf16 output) -> looser tolerance
    out_bf16 = jax.block_until_ready(seghead_forward(x, p))
    assert out_bf16.shape == (N, Cout, 2 * H, 2 * W)
    np.testing.assert_allclose(np.asarray(out_bf16, dtype=np.float32), np.asarray(ref),
                               rtol=1e-1, atol=1e-1)

    print("KERNEL_OK")
</pallas_src>

<mosaic_0001>
module attributes {stable_mosaic.version = 11 : i64} {
  func.func @kernel(%arg0: i32, %arg1: i32, %arg2: memref<1x4x128xf32, #tpu.memory_space<vmem>>, %arg3: memref<1x1x4x16xf32, #tpu.memory_space<vmem>>, %arg4: memref<4x1xf32, #tpu.memory_space<vmem>>, %arg5: memref<4x1xf32, #tpu.memory_space<vmem>>, %arg6: memref<4x32x4xf32, #tpu.memory_space<vmem>>, %arg7: memref<32x1xf32, #tpu.memory_space<vmem>>, %arg8: memref<12x32xf32, #tpu.memory_space<vmem>>, %arg9: memref<12x1xf32, #tpu.memory_space<vmem>>, %arg10: memref<1x1x12x128xf32, #tpu.memory_space<vmem>>) attributes {dimension_semantics = [#tpu.dimension_semantics<parallel>, #tpu.dimension_semantics<parallel>], iteration_bounds = array<i64: 2, 2>, scalar_prefetch = 0 : i64, scratch_operands = 0 : i64, tpu.core_type = #tpu.core_type<tc>, window_params = [{transform_indices = @transform_0, window_bounds = array<i64: 1, 4, 128>}, {transform_indices = @transform_1, window_bounds = array<i64: 1, 1, 4, 16>}, {pipeline_mode = #tpu.pipeline_mode<synchronous>, transform_indices = @transform_2, window_bounds = array<i64: 4, 1>}, {pipeline_mode = #tpu.pipeline_mode<synchronous>, transform_indices = @transform_3, window_bounds = array<i64: 4, 1>}, {pipeline_mode = #tpu.pipeline_mode<synchronous>, transform_indices = @transform_4, window_bounds = array<i64: 4, 32, 4>}, {pipeline_mode = #tpu.pipeline_mode<synchronous>, transform_indices = @transform_5, window_bounds = array<i64: 32, 1>}, {pipeline_mode = #tpu.pipeline_mode<synchronous>, transform_indices = @transform_6, window_bounds = array<i64: 12, 32>}, {pipeline_mode = #tpu.pipeline_mode<synchronous>, transform_indices = @transform_7, window_bounds = array<i64: 12, 1>}, {transform_indices = @transform_8, window_bounds = array<i64: 1, 1, 12, 128>}]} {
    %c0 = arith.constant 0 : index
    %c0_0 = arith.constant 0 : index
    %0 = vector.load %arg4[%c0, %c0_0] : memref<4x1xf32, #tpu.memory_space<vmem>>, vector<4x1xf32>
    %c0_1 = arith.constant 0 : index
    %c0_2 = arith.constant 0 : index
    %1 = vector.load %arg5[%c0_1, %c0_2] : memref<4x1xf32, #tpu.memory_space<vmem>>, vector<4x1xf32>
    %c0_3 = arith.constant 0 : index
    %c0_4 = arith.constant 0 : index
    %c0_5 = arith.constant 0 : index
    %2 = vector.load %arg2[%c0_3, %c0_4, %c0_5] : memref<1x4x128xf32, #tpu.memory_space<vmem>>, vector<1x4x128xf32>
    %3 = vector.shape_cast %2 : vector<1x4x128xf32> to vector<4x128xf32>
    %4 = vector.broadcast %0 : vector<4x1xf32> to vector<4x128xf32>
    %5 = arith.mulf %3, %4 : vector<4x128xf32>
    %6 = vector.broadcast %1 : vector<4x1xf32> to vector<4x128xf32>
    %7 = arith.addf %5, %6 : vector<4x128xf32>
    %cst = arith.constant 0.000000e+00 : f32
    %8 = vector.broadcast %cst : f32 to vector<4x128xf32>
    %9 = arith.maximumf %7, %8 : vector<4x128xf32>
    %10 = tpu.iota {dimensions = array<i32: 1>} : vector<1x128xi32>
    %c16_i32 = arith.constant 16 : i32
    %c0_i32 = arith.constant 0 : i32
    %11 = arith.cmpi eq, %c16_i32, %c0_i32 : i32
    %c1_i32 = arith.constant 1 : i32
    %12 = arith.select %11, %c1_i32, %c16_i32 : i32
    %13 = vector.broadcast %12 : i32 to vector<1x128xi32>
    %14 = arith.remsi %10, %13 : vector<1x128xi32>
    %c0_i32_6 = arith.constant 0 : i32
    %15 = vector.broadcast %c0_i32_6 : i32 to vector<1x128xi32>
    %16 = arith.cmpi ne, %14, %15 : vector<1x128xi32>
    %c0_i32_7 = arith.constant 0 : i32
    %17 = vector.broadcast %c0_i32_7 : i32 to vector<1x128xi32>
    %18 = arith.cmpi slt, %14, %17 : vector<1x128xi32>
    %c0_i32_8 = arith.constant 0 : i32
    %19 = arith.cmpi slt, %12, %c0_i32_8 : i32
    %20 = vector.broadcast %19 : i1 to vector<1x128xi1>
    %21 = vector.broadcast %20 : vector<1x128xi1> to vector<1x128xi1>
    %22 = arith.xori %18, %21 : vector<1x128xi1>
    %23 = arith.andi %22, %16 : vector<1x128xi1>
    %24 = vector.broadcast %12 : i32 to vector<1x128xi32>
    %25 = arith.addi %14, %24 : vector<1x128xi32>
    %26 = arith.select %23, %25, %14 : vector<1x128xi1>, vector<1x128xi32>
    %c15_i32 = arith.constant 15 : i32
    %27 = vector.broadcast %c15_i32 : i32 to vector<1x128xi32>
    %28 = arith.cmpi slt, %26, %27 : vector<1x128xi32>
    %29 = arith.extui %28 : vector<1x128xi1> to vector<1x128xi32>
    %30 = arith.sitofp %29 : vector<1x128xi32> to vector<1x128xf32>
    %c112_i32 = arith.constant 112 : i32
    %31 = vector.broadcast %c112_i32 : i32 to vector<1x128xi32>
    %32 = arith.cmpi sge, %10, %31 : vector<1x128xi32>
    %33 = arith.extui %32 : vector<1x128xi1> to vector<1x128xi32>
    %34 = arith.sitofp %33 : vector<1x128xi32> to vector<1x128xf32>
    %c112_i32_9 = arith.constant 112 : i32
    %35 = tpu.dynamic_rotate %9 by %c112_i32_9 dim 1 : vector<4x128xf32>, i32 -> vector<4x128xf32>
    %cst_10 = arith.constant 1.000000e+00 : f32
    %36 = vector.broadcast %cst_10 : f32 to vector<1x128xf32>
    %37 = arith.subf %36, %34 : vector<1x128xf32>
    %38 = vector.broadcast %37 : vector<1x128xf32> to vector<4x128xf32>
    %39 = arith.mulf %35, %38 : vector<4x128xf32>
    %c1_i32_11 = arith.constant 1 : i32
    %40 = arith.cmpi eq, %arg0, %c1_i32_11 : i32
    %41 = arith.extui %40 : i1 to i32
    %42 = arith.sitofp %41 : i32 to f32
    %cst_12 = arith.constant 1.000000e+00 : f32
    %43 = arith.subf %cst_12, %42 : f32
    %c0_13 = arith.constant 0 : index
    %c0_14 = arith.constant 0 : index
    %c0_15 = arith.constant 0 : index
    %c0_16 = arith.constant 0 : index
    %44 = vector.load %arg3[%c0_13, %c0_14, %c0_15, %c0_16] : memref<1x1x4x16xf32, #tpu.memory_space<vmem>>, vector<1x1x4x16xf32>
    %45 = vector.shape_cast %44 : vector<1x1x4x16xf32> to vector<4x16xf32>
    %46 = vector.broadcast %0 : vector<4x1xf32> to vector<4x16xf32>
    %47 = arith.mulf %45, %46 : vector<4x16xf32>
    %48 = vector.broadcast %1 : vector<4x1xf32> to vector<4x16xf32>
    %49 = arith.addf %47, %48 : vector<4x16xf32>
    %cst_17 = arith.constant 0.000000e+00 : f32
    %50 = vector.broadcast %cst_17 : f32 to vector<4x16xf32>
    %51 = arith.maximumf %49, %50 : vector<4x16xf32>
    %52 = vector.broadcast %43 : f32 to vector<4x16xf32>
    %53 = arith.mulf %51, %52 : vector<4x16xf32>
    %cst_18 = arith.constant 0.000000e+00 : f32
    %54 = vector.broadcast %cst_18 : f32 to vector<4x112xf32>
    %55 = tpu.concatenate %54, %53 in 1 : vector<4x112xf32>, vector<4x16xf32> -> vector<4x128xf32>
    %56 = arith.addf %39, %55 : vector<4x128xf32>
    %c127_i32 = arith.constant 127 : i32
    %57 = tpu.dynamic_rotate %9 by %c127_i32 dim 1 : vector<4x128xf32>, i32 -> vector<4x128xf32>
    %58 = vector.broadcast %30 : vector<1x128xf32> to vector<4x128xf32>
    %59 = arith.mulf %57, %58 : vector<4x128xf32>
    %c127_i32_19 = arith.constant 127 : i32
    %60 = tpu.dynamic_rotate %56 by %c127_i32_19 dim 1 : vector<4x128xf32>, i32 -> vector<4x128xf32>
    %61 = vector.broadcast %30 : vector<1x128xf32> to vector<4x128xf32>
    %62 = arith.mulf %60, %61 : vector<4x128xf32>
    %c0_20 = arith.constant 0 : index
    %c0_21 = arith.constant 0 : index
    %c0_22 = arith.constant 0 : index
    %63 = vector.load %arg6[%c0_20, %c0_21, %c0_22] : memref<4x32x4xf32, #tpu.memory_space<vmem>>, vector<1x32x4xf32>
    %64 = vector.shape_cast %63 : vector<1x32x4xf32> to vector<32x4xf32>
    %cst_23 = arith.constant dense<0.000000e+00> : vector<32x128xf32>
    %65 = tpu.matmul %64, %9, %cst_23 {dimension_numbers = #tpu.dot_dimension_numbers<[1], [0], [0], [1], [0, 0, 1, 1], [], []>} : vector<32x4xf32>, vector<4x128xf32>, vector<32x128xf32> -> vector<32x128xf32>
    %c1 = arith.constant 1 : index
    %c0_24 = arith.constant 0 : index
    %c0_25 = arith.constant 0 : index
    %66 = vector.load %arg6[%c1, %c0_24, %c0_25] : memref<4x32x4xf32, #tpu.memory_space<vmem>>, vector<1x32x4xf32>
    %67 = vector.shape_cast %66 : vector<1x32x4xf32> to vector<32x4xf32>
    %cst_26 = arith.constant dense<0.000000e+00> : vector<32x128xf32>
    %68 = tpu.matmul %67, %56, %cst_26 {dimension_numbers = #tpu.dot_dimension_numbers<[1], [0], [0], [1], [0, 0, 1, 1], [], []>} : vector<32x4xf32>, vector<4x128xf32>, vector<32x128xf32> -> vector<32x128xf32>
    %69 = arith.addf %65, %68 : vector<32x128xf32>
    %c2 = arith.constant 2 : index
    %c0_27 = arith.constant 0 : index
    %c0_28 = arith.constant 0 : index
    %70 = vector.load %arg6[%c2, %c0_27, %c0_28] : memref<4x32x4xf32, #tpu.memory_space<vmem>>, vector<1x32x4xf32>
    %71 = vector.shape_cast %70 : vector<1x32x4xf32> to vector<32x4xf32>
    %cst_29 = arith.constant dense<0.000000e+00> : vector<32x128xf32>
    %72 = tpu.matmul %71, %59, %cst_29 {dimension_numbers = #tpu.dot_dimension_numbers<[1], [0], [0], [1], [0, 0, 1, 1], [], []>} : vector<32x4xf32>, vector<4x128xf32>, vector<32x128xf32> -> vector<32x128xf32>
    %73 = arith.addf %69, %72 : vector<32x128xf32>
    %c3 = arith.constant 3 : index
    %c0_30 = arith.constant 0 : index
    %c0_31 = arith.constant 0 : index
    %74 = vector.load %arg6[%c3, %c0_30, %c0_31] : memref<4x32x4xf32, #tpu.memory_space<vmem>>, vector<1x32x4xf32>
    %75 = vector.shape_cast %74 : vector<1x32x4xf32> to vector<32x4xf32>
    %cst_32 = arith.constant dense<0.000000e+00> : vector<32x128xf32>
    %76 = tpu.matmul %75, %62, %cst_32 {dimension_numbers = #tpu.dot_dimension_numbers<[1], [0], [0], [1], [0, 0, 1, 1], [], []>} : vector<32x4xf32>, vector<4x128xf32>, vector<32x128xf32> -> vector<32x128xf32>
    %77 = arith.addf %73, %76 : vector<32x128xf32>
    %c0_33 = arith.constant 0 : index
    %c0_34 = arith.constant 0 : index
    %78 = vector.load %arg7[%c0_33, %c0_34] : memref<32x1xf32, #tpu.memory_space<vmem>>, vector<32x1xf32>
    %79 = vector.broadcast %78 : vector<32x1xf32> to vector<32x128xf32>
    %80 = arith.addf %77, %79 : vector<32x128xf32>
    %cst_35 = arith.constant 0.000000e+00 : f32
    %81 = vector.broadcast %cst_35 : f32 to vector<32x128xf32>
    %82 = arith.maximumf %80, %81 : vector<32x128xf32>
    %c0_36 = arith.constant 0 : index
    %c0_37 = arith.constant 0 : index
    %83 = vector.load %arg8[%c0_36, %c0_37] : memref<12x32xf32, #tpu.memory_space<vmem>>, vector<12x32xf32>
    %cst_38 = arith.constant dense<0.000000e+00> : vector<12x128xf32>
    %84 = tpu.matmul %83, %82, %cst_38 {dimension_numbers = #tpu.dot_dimension_numbers<[1], [0], [0], [1], [0, 0, 1, 1], [], []>} : vector<12x32xf32>, vector<32x128xf32>, vector<12x128xf32> -> vector<12x128xf32>
    %c0_39 = arith.constant 0 : index
    %c0_40 = arith.constant 0 : index
    %85 = vector.load %arg9[%c0_39, %c0_40] : memref<12x1xf32, #tpu.memory_space<vmem>>, vector<12x1xf32>
    %86 = vector.broadcast %85 : vector<12x1xf32> to vector<12x128xf32>
    %87 = arith.addf %84, %86 : vector<12x128xf32>
    %c0_41 = arith.constant 0 : index
    %c0_42 = arith.constant 0 : index
    %c0_43 = arith.constant 0 : index
    %c0_44 = arith.constant 0 : index
    %88 = vector.load %arg10[%c0_41, %c0_42, %c0_43, %c0_44] : memref<1x1x12x128xf32, #tpu.memory_space<vmem>>, vector<1x1x12x128xf32>
    %89 = vector.shape_cast %88 : vector<1x1x12x128xf32> to vector<12x128xf32>
    %90 = vector.shape_cast %87 : vector<12x128xf32> to vector<1x1x12x128xf32>
    tpu.vector_store %arg10[%c0_41, %c0_42, %c0_43, %c0_44], %90 {strides = array<i32>} : memref<1x1x12x128xf32, #tpu.memory_space<vmem>>, vector<1x1x12x128xf32>,
    return
  }
  func.func @transform_0(%arg0: i32, %arg1: i32) -> (i32, i32, i32) {
    %c0_i32 = arith.constant 0 : i32
    %c0_i32_0 = arith.constant 0 : i32
    return %arg1, %c0_i32, %arg0 : i32, i32, i32
  }
  func.func @transform_1(%arg0: i32, %arg1: i32) -> (i32, i32, i32, i32) {
    %c0_i32 = arith.constant 0 : i32
    %c0_i32_0 = arith.constant 0 : i32
    %c0_i32_1 = arith.constant 0 : i32
    return %arg1, %arg0, %c0_i32, %c0_i32_0 : i32, i32, i32, i32
  }
  func.func @transform_2(%arg0: i32, %arg1: i32) -> (i32, i32) {
    %c0_i32 = arith.constant 0 : i32
    %c0_i32_0 = arith.constant 0 : i32
    %c0_i32_1 = arith.constant 0 : i32
    return %c0_i32, %c0_i32_0 : i32, i32
  }
  func.func @transform_3(%arg0: i32, %arg1: i32) -> (i32, i32) {
    %c0_i32 = arith.constant 0 : i32
    %c0_i32_0 = arith.constant 0 : i32
    %c0_i32_1 = arith.constant 0 : i32
    return %c0_i32, %c0_i32_0 : i32, i32
  }
  func.func @transform_4(%arg0: i32, %arg1: i32) -> (i32, i32, i32) {
    %c0_i32 = arith.constant 0 : i32
    %c0_i32_0 = arith.constant 0 : i32
    %c0_i32_1 = arith.constant 0 : i32
    %c0_i32_2 = arith.constant 0 : i32
    return %c0_i32, %c0_i32_0, %c0_i32_1 : i32, i32, i32
  }
  func.func @transform_5(%arg0: i32, %arg1: i32) -> (i32, i32) {
    %c0_i32 = arith.constant 0 : i32
    %c0_i32_0 = arith.constant 0 : i32
    %c0_i32_1 = arith.constant 0 : i32
    return %c0_i32, %c0_i32_0 : i32, i32
  }
  func.func @transform_6(%arg0: i32, %arg1: i32) -> (i32, i32) {
    %c0_i32 = arith.constant 0 : i32
    %c0_i32_0 = arith.constant 0 : i32
    %c0_i32_1 = arith.constant 0 : i32
    return %c0_i32, %c0_i32_0 : i32, i32
  }
  func.func @transform_7(%arg0: i32, %arg1: i32) -> (i32, i32) {
    %c0_i32 = arith.constant 0 : i32
    %c0_i32_0 = arith.constant 0 : i32
    %c0_i32_1 = arith.constant 0 : i32
    return %c0_i32, %c0_i32_0 : i32, i32
  }
  func.func @transform_8(%arg0: i32, %arg1: i32) -> (i32, i32, i32, i32) {
    %c0_i32 = arith.constant 0 : i32
    %c0_i32_0 = arith.constant 0 : i32
    %c0_i32_1 = arith.constant 0 : i32
    return %arg1, %arg0, %c0_i32, %c0_i32_0 : i32, i32, i32, i32
  }
}

</mosaic_0001>

<bundles_post_ra>
// kernel: tpu_custom_call.1
= control target key start
LH: loop header
LB: loop body
LE: loop exit
PB: predicated region body
PF: predicated region fallthrough
CT: control target
= control target key end

     0   :  { %s1376_s27 = smov 0   ;;  %s1378_s28 = smov 0   ;;  %s1549_s0 = inlined_call_operand.vmem [shape: f32[2,4,256], index: 0, kind: input, shape index: {}]   ;;  %s1550_s1 = inlined_call_operand.vmem [shape: f32[2,2,4,16], index: 1, kind: input, shape index: {}]   ;;  %s1551_s2 = inlined_call_operand.vmem [shape: f32[4,1], index: 2, kind: input, shape index: {}]   ;;  %s1552_s3 = inlined_call_operand.vmem [shape: f32[4,1], index: 3, kind: input, shape index: {}]   ;;  %s1553_s4 = inlined_call_operand.vmem [shape: f32[4,32,4], index: 4, kind: input, shape index: {}]   ;;  %s1554_s5 = inlined_call_operand.vmem [shape: f32[32,1], index: 5, kind: input, shape index: {}]   ;;  %s1555_s6 = inlined_call_operand.vmem [shape: f32[12,32], index: 6, kind: input, shape index: {}]   ;;  %s1556_s7 = inlined_call_operand.vmem [shape: f32[12,1], index: 7, kind: input, shape index: {}]   ;;  %s1557_s8 = inlined_call_operand.vmem [shape: f32[2,2,12,128], index: 8, kind: output, shape index: {}]  }
   0x1   :  { %s1380_s29 = smov 0   ;;  %s1382_s30 = smov 0  }
   0x2   :  { %s1384_s9 = smov 0  }
   0x3 LB: > { %s27_s10 = sadd.s32 1, %s1317_s29  ;;  %s30_s11 = sadd.s32 1, %s1321_s30  ;;  %s1325_s9 = sphi %s1384_s9, %s18_s9   ;;  %s1321_s30 = sphi %s1382_s30, %s1561_s30   ;;  %s1317_s29 = sphi %s1380_s29, %s1560_s29   ;;  %s1313_s28 = sphi %s1378_s28, %s1559_s28   ;;  %s1309_s27 = sphi %s1376_s27, %s1558_s27  }
   0x4   : > { %p28_p0 = scmp.ge.s32.totalorder %s27_s10, 2  ;;  %p1106_p1 = scmp.ge.s32.totalorder %s1325_s9, 1 }
   0x5   : > { %p296_p2 = scmp.lt.s32.totalorder %s1325_s9, 5 }
   0x6   : > { %s1563_s10 = smov (%p28_p0, %s27_s10), 0  ;;  %s1565_s11 = smov (!%p28_p0, %s30_s11), %s1321_s30 }
   0x7   : > { %p297_p3 = pnand %p1106_p1, %p296_p2  ;;  %p32_p4 = scmp.ge.s32.totalorder %s1565_s11, 2 }
   0x8   : > { %v370_v0 = vld [vmem:[%s1551_s2] sm:$0xf] (!%p297_p3)  ;;  %v1327_v1 = vmov (!%p297_p3), 0   ;;  %p345_p5 = scmp.lt.s32.totalorder (!%p297_p3), %s1309_s27, 1  ;;  %p347_p6 = scmp.lt.s32.totalorder (!%p297_p3), %s1313_s28, 1  ;;  %vm442_vm0 = vcmask (!%p297_p3), 31744   ;;  %v386_v20 = vlaneseq (!%p297_p3) }
   0x9   : > { %s1567_s11 = smov (%p32_p4, %s1565_s11), 0  ;;  %300 = sbr.rel (%p297_p3) target bundleno = 833 (0x341), region = 52 }
   0xa   : > { %1285 = vset.pattern.permute.xlu0 (!%p297_p3), %v1327_v1  ;;  %1286 = vset.pattern.permute.xlu1 (!%p297_p3), %v1327_v1  ;;  %v371_v2 = vld [vmem:[%s1552_s3] sm:$0xf] (!%p297_p3)  ;;  %p410_p7 = scmp.eq.s32.totalorder (!%p297_p3), %s1313_s28, 1  ;;  %s1328_s15 = smov (!%p297_p3), 127   ;;  %v864_v17 = vld [vmem:[%s1554_s5 + $0x10] sm:$0xff] (!%p297_p3)  ;;  %v387_v21 = vand.u32 (!%p297_p3), 127, %v386_v20 }
   0xb   : > { %375 = vperm.xlu0 (!%p297_p3), %1285, %v370_v0   ;;  %v1116_v9 = vld [vmem:[%s1553_s4 + $0x20] sm:$0xff] (!%p297_p3)  ;;  %v1330_v23 = vmov (!%p297_p3), 0.0   ;;  %vm455_vm3 = vcmask (!%p297_p3), 1043456   ;;  %vm424_vm4 = vcmask (!%p297_p3), 916480   ;;  %v1131_v30 = vld [vmem:[%s1553_s4 + $0x48] sm:$0xff] (!%p297_p3)  ;;  %v1132_v31 = vld [vmem:[%s1553_s4 + $0x50] sm:$0xff] (!%p297_p3) }
   0xc   : > { %1180 = vmatprep.mubr.msk.f32.mxu1 (!%p297_p3), %vm442_vm0, %v1116_v9  ;;  %v862_v15 = vld [vmem:[%s1554_s5] sm:$0xff] (!%p297_p3)  ;;  %v392_v22 = vand.u32 (!%p297_p3), 15, %v387_v21  ;;  %vm403_vm1 = vcmp.ge.s32.totalorder (!%p297_p3), %v387_v21, 112  ;;  %v1133_v36 = vld [vmem:[%s1553_s4 + $0x58] sm:$0xff] (!%p297_p3)  ;;  %v1117_v37 = vld [vmem:[%s1553_s4 + $0x28] sm:$0xff] (!%p297_p3)  ;;  %vm908_vm5 = vcmask (!%p297_p3), 261120  }
   0xd   : > { %v896_v18 = vld [vmem:[%s1556_s7] sm:$0xff] (!%p297_p3)  ;;  %v1115_v24 = vsel (!%p297_p3), %vm403_vm1, 1.0, %v1330_v23  ;;  %v1118_v38 = vld [vmem:[%s1553_s4 + $0x30] sm:$0xff] (!%p297_p3)  ;;  %v863_v40 = vld [vmem:[%s1554_s5 + $0x8] sm:$0xff] (!%p297_p3) }
   0xe   : > { %v1130_v19 = vld [vmem:[%s1553_s4 + $0x40] sm:$0xff] (!%p297_p3)  ;;  %vm400_vm2 = vcmp.lt.s32.totalorder (!%p297_p3), %v392_v22, 15  ;;  %v408_v27 = vsub.f32 (!%p297_p3), 1.0, %v1115_v24  ;;  %v1119_v41 = vld [vmem:[%s1553_s4 + $0x38] sm:$0xff] (!%p297_p3)  ;;  %v434_v44 = vld [vmem:[%s1553_s4 + $0x8] sm:$0xff] (!%p297_p3) }
   0xf   : > { %381 = vperm.xlu0 (!%p297_p3), %1285, %v371_v2   ;;  %1196 = vmatprep.mubr.msk.f32.mxu0 (!%p297_p3), %vm442_vm0, %v1130_v19  ;;  %v1114_v25 = vsel (!%p297_p3), %vm400_vm2, 1.0, %v1330_v23  ;;  %v1139_v39 = vld [vmem:[%s1553_s4 + $0x60] sm:$0xff] (!%p297_p3)  ;;  %v865_v43 = vld [vmem:[%s1554_s5 + $0x18] sm:$0xff] (!%p297_p3)  ;;  %v435_v45 = vld [vmem:[%s1553_s4 + $0x10] sm:$0xff] (!%p297_p3) }
  0x10   : > { %s1569_s27 = smov (!%p345_p5, %s1309_s27), 1  ;;  %v433_v42 = vld [vmem:[%s1553_s4] sm:$0xff]  ;;  %v897_v46 = vld [vmem:[%s1556_s7 + $0x8] sm:$0xf]  ;;  %v436_v47 = vld [vmem:[%s1553_s4 + $0x18] sm:$0xff] }
  0x11   : > { %s1418_s16 = scalar_select %p347_p6, %s1313_s28, 1  ;;  %v1140_v50 = vld [vmem:[%s1553_s4 + $0x68] sm:$0xff]  ;;  %v1141_v51 = vld [vmem:[%s1553_s4 + $0x70] sm:$0xff]  ;;  %v1142_v52 = vld [vmem:[%s1553_s4 + $0x78] sm:$0xff] }
  0x12   : > { %s1107_s17 = sshll.u32 %s1569_s27, 1  ;;  %v894_v53 = vld [vmem:[%s1555_s6] sm:$0xff]  ;;  %s1112_s21 = sshll.u32 %s1569_s27, 2 }
  0x13   : > { %s350_s18 = sadd.s32 %s1107_s17, %s1418_s16  ;;  %s1329_s17 = smov 112  }
  0x14   : > { %s1108_s19 = sshll.u32 %s350_s18, 2 }
  0x15   : > { %s411_s20 = scalar_select %p410_p7, 1, 0 }
  0x16   : > { %s352_s23 = scalar_lea.vmem %s1549_s0, %s1108_s19  ;;  %s360_s26 = scalar_lea.vmem %s1550_s1, %s1108_s19 }
  0x17   : > { %v372_v4 = vld [vmem:[%s352_s23] sm:$0xf]  ;;  %s412_s12 = scvt.s32.f32 %s411_s20  ;;  %s1111_s20 = sshll.u32 %s1418_s16, 1 }
  0x18   : > { %v414_v5 = vld [vmem:[%s360_s26] sm:$0xf]  ;;  %s367_s22 = sadd.s32 %s1112_s21, %s1111_s20 }
  0x19   : > { %s413_s13 = ssub.f32 1.0, %s412_s12  ;;  %s1113_s23 = sshll.u32 %s367_s22, 3 }
  0x1b   : > { %v418_v14 = vstv %s413_s13 }
  0x8a   : > { %v376_v3 = vpop.permute.xlu0 %375 }
  0x8b   : > { %v378_v6 = vmul.f32 %v376_v3, %v372_v4  ;;  %v415_v7 = vmul.f32 %v414_v5, %v376_v3 }
  0x8e   : > { %v382_v8 = vpop.permute.xlu0 %381 }
  0x8f   : > { %v384_v10 = vadd.f32 %v382_v8, %v378_v6  ;;  %v416_v11 = vadd.f32 %v415_v7, %v382_v8 }
  0x91   : > { %v385_v12 = vmax.f32 %v384_v10, 0.0  ;;  %v417_v13 = vmax.f32 %v416_v11, 0.0 }
  0x93   : > { %427 = vrot.lane.b32.xlu0 %v385_v12, %s1328_s15  ;;  %406 = vrot.lane.b32.xlu1 %v385_v12, %s1329_s17  ;;  %v419_v16 = vmul.f32 %v418_v14, %v417_v13 }
  0x97   : > { %868 = vperm.xlu0 %1285, %v862_v15   ;;  %421 = vrot.lane.b32.xlu1 %v419_v16, %s1329_s17  ;;  %v895_v16 = vld [vmem:[%s1555_s6 + $0x8] sm:$0xf] }
  0x9b   : > { %878 = vperm.xlu0 %1285, %v864_v17  }
  0x9f   : > { %900 = vperm.xlu0 %1285, %v896_v18  }
 0x105   : > { %v428_v26 = vpop.permute.xlu0 %427  ;;  %v407_v28 = vpop.permute.xlu1 %406 }
 0x106   : > { %v429_v29 = vmul.f32 %v1114_v25, %v428_v26  ;;  %v409_v32 = vmul.f32 %v408_v27, %v407_v28 }
 0x108   : > { %1194 = vmatprep.subr.msk.mxu0 %vm455_vm3, %v429_v29 }
 0x109   : > { %1195 = vmatpush3.msk.msra.mxu0 %vm455_vm3, %v429_v29  ;;  %v422_v33 = vpop.permute.xlu1 %421 }
 0x10a   : > { %v425_v34 = vsel %vm424_vm4, 0.0, %v422_v33  ;;  %1197 = vmatmul.mubr.msk.f32.vlgmr.msra.gmra.mrb[0].mxu0 %vm442_vm0, %v1131_v30 }
 0x10b   : > { %v426_v35 = vadd.f32 %v425_v34, %v409_v32  ;;  %1199 = vmatprep.mubr.msk.f32.mxu0 %vm442_vm0, %v1132_v31 }
 0x10d   : > { %430 = vrot.lane.b32.xlu1 %v426_v35, %s1328_s15  ;;  %1178 = vmatprep.subr.msk.mxu1 %vm455_vm3, %v426_v35  ;;  %s369_s15 = scalar_lea.vmem %s1557_s8, %s1113_s23 }
 0x10e   : > { %1179 = vmatpush3.msk.msra.mxu1 %vm455_vm3, %v426_v35  ;;  %1200 = vmatmul.mubr.msk.f32.gmra.mrb[2].mxu0 %vm442_vm0, %v1133_v36 }
 0x10f   : > { %1186 = vmatprep.subr.msk.mxu1 %vm455_vm3, %v385_v12  ;;  %1181 = vmatmul.mubr.msk.f32.vlgmr.msra.gmra.mrb[0].mxu1 %vm442_vm0, %v1117_v37 }
 0x110   : > { %1187 = vmatpush3.msk.msra.mxu1 %vm455_vm3, %v385_v12  ;;  %1183 = vmatprep.mubr.msk.f32.mxu1 %vm442_vm0, %v1118_v38 }
 0x111   : > { %1204 = vmatprep.mubr.msk.f32.mxu0 %vm442_vm0, %v1139_v39  ;;  %873 = vperm.xlu1 %1286, %v863_v40  }
 0x113   : > { %1184 = vmatmul.mubr.msk.f32.gmra.mrb[2].mxu1 %vm442_vm0, %v1119_v41 }
 0x114   : > { %1188 = vmatprep.mubr.msk.f32.mxu1 %vm442_vm0, %v433_v42 }
 0x115   : > { %883 = vperm.xlu1 %1286, %v865_v43  }
 0x116   : > { %v869_v60 = vpop.permute.xlu0 %868 }
 0x117   : > { %1189 = vmatmul.mubr.msk.f32.vlgmr.msra.gmra.mrb[0].mxu1 %vm442_vm0, %v434_v44 }
 0x118   : > { %1191 = vmatprep.mubr.msk.f32.mxu1 %vm442_vm0, %v435_v45 }
 0x119   : > { %905 = vperm.xlu1 %1286, %v897_v46  }
 0x11a   : > { %v879_v9 = vpop.permute.xlu0 %878 }
 0x11b   : > { %1192 = vmatmul.mubr.msk.f32.gmra.mrb[2].mxu1 %vm442_vm0, %v436_v47 }
 0x11c   : > { %1218 = vmatprep.mubr.msk.f32.mxu1 %vm908_vm5, %v894_v53 }
 0x11e   : > { %v901_v19 = vpop.permute.xlu0 %900 }
 0x17f   : > { %v431_v48 = vpop.permute.xlu1 %430 }
 0x180   : > { %v432_v49 = vmul.f32 %v1114_v25, %v431_v48 }
 0x182   : > { %1202 = vmatprep.subr.msk.mxu0 %vm455_vm3, %v432_v49 }
 0x183   : > { %1203 = vmatpush3.msk.msra.mxu0 %vm455_vm3, %v432_v49 }
 0x184   : > { %1205 = vmatmul.mubr.msk.f32.vlgmr.msra.gmra.mrb[0].mxu0 %vm442_vm0, %v1140_v50 }
 0x185   : > { %1207 = vmatprep.mubr.msk.f32.mxu0 %vm442_vm0, %v1141_v51 }
 0x188   : > { %1208 = vmatmul.mubr.msk.f32.gmra.mrb[2].mxu0 %vm442_vm0, %v1142_v52 }
 0x190   : > { %v874_v59 = vpop.permute.xlu1 %873 }
 0x194   : > { %v884_v8 = vpop.permute.xlu1 %883 }
 0x198   : > { %v906_v17 = vpop.permute.xlu1 %905 }
 0x1ea   : > { %v1190_v54 = vpop.f32.mrb[0].mxu1 }
 0x1eb   : > { %v625_v55 = vpop.f32.mrb[1].mxu1 }
 0x1ee   : > { %v1193_v56 = vpop.f32.mrb[2].mxu1 }
 0x1ef   : > { %v635_v57 = vpop.f32.mrb[3].mxu1 }
 0x257   : > { %v1206_v58 = vpop.f32.mrb[0].mxu0 }
 0x258   : > { %v1229_v61 = vadd.f32 %v1206_v58, %v1190_v54  ;;  %v839_v62 = vpop.f32.mrb[1].mxu0 }
 0x259   : > { %v1230_v63 = vadd.f32 %v839_v62, %v625_v55 }
 0x25a   : > { %v887_v0 = vadd.f32 %v1229_v61, %v874_v59 }
 0x25b   : > { %v886_v1 = vadd.f32 %v1230_v63, %v869_v60  ;;  %v1209_v2 = vpop.f32.mrb[2].mxu0 }
 0x25c   : > { %v891_v3 = vmax.f32 %v887_v0, 0.0  ;;  %v1231_v4 = vadd.f32 %v1209_v2, %v1193_v56  ;;  %v849_v5 = vpop.f32.mrb[3].mxu0 }
 0x25d   : > { %v890_v6 = vmax.f32 %v886_v1, 0.0  ;;  %v1232_v7 = vadd.f32 %v849_v5, %v635_v57 }
 0x25e   : > { %v889_v10 = vadd.f32 %v1231_v4, %v884_v8 }
 0x25f   : > { %v1221_v11 = vpack.c.bf16 %v891_v3, %v890_v6  ;;  %v888_v12 = vadd.f32 %v1232_v7, %v879_v9 }
 0x260   : > { %v893_v13 = vmax.f32 %v889_v10, 0.0 }
 0x261   : > { %v892_v14 = vmax.f32 %v888_v12, 0.0  ;;  %1222 = vmatprep.subr.bf16.mxu1 %v1221_v11 }
 0x262   : > { %1224 = vmatpush3.bf16.msra.mxu1 %v1221_v11 }
 0x263   : > { %v1225_v15 = vpack.c.bf16 %v893_v13, %v892_v14 }
 0x265   : > { %1226 = vmatprep.subr.bf16.mxu1 %v1225_v15 }
 0x266   : > { %1228 = vmatpush3.bf16.msra.mxu1 %v1225_v15 }
 0x269   : > { %1219 = vmatmul.mubr.msk.f32.vlgmr.msra.gmra.mrb[4].mxu1 %vm908_vm5, %v895_v16 }
 0x33c   : > { %v1220_v18 = vpop.f32.mrb[4].mxu1 }
 0x33d   : > { %v987_v20 = vadd.f32 %v1220_v18, %v906_v17  ;;  %v981_v21 = vpop.f32.mrb[5].mxu1 }
 0x33e   : > { %v982_v22 = vadd.f32 %v981_v21, %v901_v19 }
 0x33f   : > { %991 = vst [vmem:[%s369_s15 + $0x8] sm:$0xf] %v987_v20 }
 0x340   : > { %990 = vst [vmem:[%s369_s15] sm:$0xff] %v982_v22 }
 0x341 PF: > { %s18_s9 = sadd.s32 1, %s1325_s9   ;;  %s1558_s27 = smov %s1317_s29 }
 0x342   : > { %p15_p8 = scmp.ge.s32.totalorder %s18_s9, 6   ;;  %s1559_s28 = smov %s1321_s30 }
 0x343   : > { %s1560_s29 = smov %s1563_s10  ;;  %s1561_s30 = smov %s1567_s11 }
 0x344   :  { %17 = sbr.rel (!%p15_p8) target bundleno = 3 (0x3), region = 88 }

</bundles_post_ra>
